<compile_context>
chip_gen: v5e
topology: v5e:2x2
jax: 0.10.0
libtpu: 0.0.40
codegen_flags: <defaults>
</compile_context>

<pallas_src>
import functools

import jax
import jax.numpy as jnp
from jax.experimental import pallas as pl
from jax.experimental.pallas import tpu as pltpu

_LANE = 128
_COL_TILE_CANDIDATES = (2048, 1024, 512, 256, 128)   # multiples of 128, descending


def _round_up(x: int, m: int) -> int:
    return ((x + m - 1) // m) * m


def _vmem_limit_and_buffer_budget():
    """(vmem_limit_bytes for CompilerParams, per-input-buffer byte budget)."""
    cap = 64 * 1024 * 1024                      # conservative default (v7x physical)
    try:
        info = pltpu.get_tpu_info()
        for attr in ("vmem_capacity_bytes", "vmem_bytes", "vmem_size_bytes"):
            v = getattr(info, attr, None)
            if isinstance(v, int) and v > 0:
                cap = int(v)
                break
    except Exception:
        pass
    vmem_limit = min((cap * 3) // 4, 64 * 1024 * 1024)   # 64 MiB v5e/v6e, 48 MiB v7x
    per_buffer = vmem_limit // 3                          # 2x input buffers + headroom
    return vmem_limit, per_buffer


def _tensorcores_per_device() -> int:
    """Best-effort TensorCore count per device (v7x / megacore parts -> 2)."""
    try:
        info = pltpu.get_tpu_info()
        for attr in ("num_cores", "num_tensorcores", "tensor_core_count", "core_count"):
            v = getattr(info, attr, None)
            if isinstance(v, int) and v >= 1:
                return int(v)
    except Exception:
        pass
    try:
        kind = jax.devices()[0].device_kind.lower()
        if any(tag in kind for tag in ("v7", "v4", "v5p")):
            return 2
    except Exception:
        pass
    return 1


def _pick_column_tiling(n: int, j: int):
    """Choose (tile_n, col_start, num_k) so (approximately) only the kept tail is DMA'd.

    col_start is a multiple of tile_n at (or just below) the lane-aligned floor
    of j.  Large tiles are preferred; a bounded masked prefix (<= 12.5% of the
    useful tail) is accepted when it buys bigger tiles, which avoids the
    gcd-degenerate 128-column case.
    """
    col_start_lane = (j // _LANE) * _LANE
    tail_lane = n - col_start_lane                       # >= 1 since j < n
    cap = max(_LANE, _round_up(tail_lane, _LANE))
    cands = [c for c in _COL_TILE_CANDIDATES if c <= cap]
    zero_waste = max(c for c in cands if col_start_lane % c == 0)   # 128 always works
    tile_n = zero_waste
    if zero_waste < 1024:
        limit = tail_lane // 8
        for c in cands:                                  # descending
            waste = col_start_lane - (col_start_lane // c) * c
            if waste <= limit:
                tile_n = max(tile_n, c)
                break
    col_start = (col_start_lane // tile_n) * tile_n
    num_k = pl.cdiv(n - col_start, tile_n)
    return tile_n, col_start, num_k


def _value_risk_kernel(q_ref, o_ref, acc_ref, *, j, col_start, tile_n, n_cols,
                       inv, prefix_mask, tail_mask):
    """One (batch-tile, column-tile) step of the tail-mean reduction."""
    k = pl.program_id(1)
    nk = pl.num_programs(1)

    @pl.when(k == 0)
    def _init():
        acc_ref[...] = jnp.zeros_like(acc_ref)

    # Upcast in-vreg; q may arrive as bf16 (no wrapper-side f32 copy in HBM).
    q = q_ref[...].astype(jnp.float32)                    # (tile_b, tile_n)

    def lane_accumulate(qt):
        # Fold tile_n columns into 128 lanes with pure VPU adds (no per-step
        # cross-lane reduce); static 128-wide slices sit on vreg boundaries.
        s = qt[:, 0:_LANE]
        for c in range(1, tile_n // _LANE):
            s = s + qt[:, c * _LANE:(c + 1) * _LANE]
        acc_ref[...] += s

    if prefix_mask or tail_mask:
        conds = []
        if prefix_mask:
            conds.append(k == 0)                          # j lives in column tile 0
        if tail_mask:
            conds.append(k == nk - 1)                     # ragged last tile
        is_edge = conds[0] if len(conds) == 1 else jnp.logical_or(*conds)

        @pl.when(is_edge)
        def _edge():
            col = (jax.lax.broadcasted_iota(jnp.int32, q.shape, 1)
                   + (col_start + k * tile_n))
            if prefix_mask and tail_mask:
                keep = (col >= j) & (col < n_cols)
            elif prefix_mask:
                keep = col >= j
            else:
                keep = col < n_cols
            lane_accumulate(jnp.where(keep, q, 0.0))

        @pl.when(jnp.logical_not(is_edge))
        def _interior():
            lane_accumulate(q)
    else:
        lane_accumulate(q)

    @pl.when(k == nk - 1)
    def _finish():
        # One cross-lane (XLU) reduce per batch tile; inv is a trace-time const.
        total = jnp.sum(acc_ref[...], axis=-1, keepdims=True)
        o_ref[...] = (total * inv).astype(o_ref.dtype)


def value_risk_management(q: jax.Array, u_q: float = 0.75) -> jax.Array:
    """Mean over q[:, int(u_q * N):] per batch row (matches the torch module)."""
    assert q.ndim == 2, "expected q of shape (batch, num_quantiles)"
    b, n = q.shape
    j = int(u_q * n)                                     # static, matches torch int(...)
    out_dtype = q.dtype if jnp.issubdtype(q.dtype, jnp.floating) else jnp.float32

    if j < 0:                                            # python-slice semantics (u_q < 0)
        j = max(n + j, 0)
    if j >= n:                                           # empty slice -> mean == NaN
        return jnp.full((b,), jnp.nan, dtype=out_dtype)

    # ---- column tiling: only DMA (approximately) the kept tail --------------
    tile_n, col_start, num_k = _pick_column_tiling(n, j)
    col_block0 = col_start // tile_n
    prefix_mask = j > col_start
    tail_mask = col_start + num_k * tile_n > n

    # ---- batch tiling: biggest tile under a chip-derived VMEM budget --------
    itemsize = jnp.dtype(q.dtype).itemsize
    sub = {4: 8, 2: 16, 1: 32}.get(itemsize, 8)          # packed sublane multiple
    vmem_limit, per_buf = _vmem_limit_and_buffer_budget()
    tile_b = min(b, max(sub, per_buf // (tile_n * itemsize)))
    n_cores = _tensorcores_per_device()
    if n_cores > 1 and b >= 2 * sub:
        # Ensure the "parallel" batch axis has >= n_cores tiles to shard across
        # TensorCores (v7x / megacore); negligible cost otherwise.
        tile_b = min(tile_b, _round_up(pl.cdiv(b, n_cores), sub))
    if tile_b >= b:
        tile_b = b                                       # full-dim block is always legal
    else:
        tile_b = max(sub, (tile_b // sub) * sub)
    grid_b = pl.cdiv(b, tile_b)

    inv = 1.0 / float(n - j)                             # trace-time constant

    kernel = functools.partial(
        _value_risk_kernel, j=j, col_start=col_start, tile_n=tile_n, n_cols=n,
        inv=inv, prefix_mask=prefix_mask, tail_mask=tail_mask)

    out = pl.pallas_call(
        kernel,
        out_shape=jax.ShapeDtypeStruct((b, 1), jnp.float32),
        grid_spec=pltpu.PrefetchScalarGridSpec(
            num_scalar_prefetch=0,
            grid=(grid_b, num_k),                        # reduction axis last
            in_specs=[pl.BlockSpec((tile_b, tile_n),
                                   lambda i, k: (i, k + col_block0))],
            out_specs=pl.BlockSpec((tile_b, 1), lambda i, k: (i, 0)),
            scratch_shapes=[pltpu.VMEM((tile_b, _LANE), jnp.float32)],
        ),
        compiler_params=pltpu.CompilerParams(
            dimension_semantics=("parallel", "arbitrary"),
            vmem_limit_bytes=vmem_limit,
        ),
    )(q)                                                 # native dtype; upcast in-vreg
    return out[:, 0].astype(out_dtype)


if __name__ == "__main__":
    key = jax.random.PRNGKey(0)

    def reference(q, u_q):
        j = int(u_q * q.shape[-1])
        return jnp.mean(q[:, j:].astype(jnp.float32), axis=-1)

    # Exercises: lane-boundary mask, aligned-tail-only DMA (no mask), ragged
    # N % 128 != 0, bf16 packing, multi-column-tile edge/interior paths, and
    # the bounded-prefix wide-tile path.
    cases = [
        ((8, 128), 0.75, jnp.float32),
        ((16, 512), 0.75, jnp.float32),
        ((32, 200), 0.60, jnp.float32),
        ((1032, 256), 0.75, jnp.bfloat16),
        ((24, 1152), 0.40, jnp.float32),
        ((16, 8192), 0.30, jnp.float32),
    ]

    ok = True
    for shape, u_q, dtype in cases:
        key, subkey = jax.random.split(key)
        q = jax.random.normal(subkey, shape, dtype=jnp.float32).astype(dtype)
        out = jax.block_until_ready(value_risk_management(q, u_q=u_q))
        expect = reference(q, u_q)
        tol = 1e-4 if dtype == jnp.float32 else 2e-2
        if out.shape != (shape[0],) or not jnp.allclose(
                out.astype(jnp.float32), expect, atol=tol, rtol=tol):
            ok = False
            print("MISMATCH", shape, u_q, dtype)

    if ok:
        print("KERNEL_OK")
</pallas_src>

<mosaic_0001>
module attributes {stable_mosaic.version = 11 : i64} {
  func.func @_value_risk_kernel(%arg0: i32, %arg1: i32, %arg2: memref<8x128xf32, #tpu.memory_space<vmem>>, %arg3: memref<8x1xf32, #tpu.memory_space<vmem>>, %arg4: memref<8x128xf32, #tpu.memory_space<vmem>>) attributes {dimension_semantics = [#tpu.dimension_semantics<parallel>, #tpu.dimension_semantics<arbitrary>], iteration_bounds = array<i64: 1, 1>, scalar_prefetch = 0 : i64, scratch_operands = 1 : i64, tpu.core_type = #tpu.core_type<tc>, window_params = [{transform_indices = @transform_0, window_bounds = array<i64: 8, 128>}, {transform_indices = @transform_1, window_bounds = array<i64: 8, 1>}]} {
    %c0_i32 = arith.constant 0 : i32
    %0 = arith.cmpi eq, %arg1, %c0_i32 : i32
    %1 = arith.extui %0 : i1 to i32
    %c0_i32_0 = arith.constant 0 : i32
    %2 = arith.cmpi ne, %1, %c0_i32_0 : i32
    scf.if %2 {
      %cst = arith.constant 0.000000e+00 : f32
      %13 = vector.broadcast %cst : f32 to vector<8x128xf32>
      %c0_7 = arith.constant 0 : index
      %c0_8 = arith.constant 0 : index
      %14 = vector.load %arg4[%c0_7, %c0_8] : memref<8x128xf32, #tpu.memory_space<vmem>>, vector<8x128xf32>
      tpu.vector_store %arg4[%c0_7, %c0_8], %13 {strides = array<i32>} : memref<8x128xf32, #tpu.memory_space<vmem>>, vector<8x128xf32>,
    } else {
    }
    %c0 = arith.constant 0 : index
    %c0_1 = arith.constant 0 : index
    %3 = vector.load %arg2[%c0, %c0_1] : memref<8x128xf32, #tpu.memory_space<vmem>>, vector<8x128xf32>
    %c0_i32_2 = arith.constant 0 : i32
    %4 = arith.cmpi eq, %arg1, %c0_i32_2 : i32
    %5 = arith.extui %4 : i1 to i32
    %c0_i32_3 = arith.constant 0 : i32
    %6 = arith.cmpi ne, %5, %c0_i32_3 : i32
    scf.if %6 {
      %13 = tpu.iota {dimensions = array<i32: 1>} : vector<8x128xi32>
      %c128_i32 = arith.constant 128 : i32
      %14 = arith.muli %arg1, %c128_i32 : i32
      %c0_i32_7 = arith.constant 0 : i32
      %15 = arith.addi %c0_i32_7, %14 : i32
      %16 = vector.broadcast %15 : i32 to vector<8x128xi32>
      %17 = arith.addi %13, %16 : vector<8x128xi32>
      %c96_i32 = arith.constant 96 : i32
      %18 = vector.broadcast %c96_i32 : i32 to vector<8x128xi32>
      %19 = arith.cmpi sge, %17, %18 : vector<8x128xi32>
      %cst = arith.constant 0.000000e+00 : f32
      %20 = vector.broadcast %cst : f32 to vector<8x128xf32>
      %21 = arith.select %19, %3, %20 : vector<8x128xi1>, vector<8x128xf32>
      %c0_8 = arith.constant 0 : index
      %c0_9 = arith.constant 0 : index
      %22 = vector.load %arg4[%c0_8, %c0_9] : memref<8x128xf32, #tpu.memory_space<vmem>>, vector<8x128xf32>
      %23 = arith.addf %22, %21 : vector<8x128xf32>
      %c0_10 = arith.constant 0 : index
      %c0_11 = arith.constant 0 : index
      %24 = vector.load %arg4[%c0_10, %c0_11] : memref<8x128xf32, #tpu.memory_space<vmem>>, vector<8x128xf32>
      tpu.vector_store %arg4[%c0_10, %c0_11], %23 {strides = array<i32>} : memref<8x128xf32, #tpu.memory_space<vmem>>, vector<8x128xf32>,
    } else {
    }
    %true = arith.constant true
    %7 = arith.xori %4, %true : i1
    %8 = arith.extui %7 : i1 to i32
    %c0_i32_4 = arith.constant 0 : i32
    %9 = arith.cmpi ne, %8, %c0_i32_4 : i32
    scf.if %9 {
      %c0_7 = arith.constant 0 : index
      %c0_8 = arith.constant 0 : index
      %13 = vector.load %arg4[%c0_7, %c0_8] : memref<8x128xf32, #tpu.memory_space<vmem>>, vector<8x128xf32>
      %14 = arith.addf %13, %3 : vector<8x128xf32>
      %c0_9 = arith.constant 0 : index
      %c0_10 = arith.constant 0 : index
      %15 = vector.load %arg4[%c0_9, %c0_10] : memref<8x128xf32, #tpu.memory_space<vmem>>, vector<8x128xf32>
      tpu.vector_store %arg4[%c0_9, %c0_10], %14 {strides = array<i32>} : memref<8x128xf32, #tpu.memory_space<vmem>>, vector<8x128xf32>,
    } else {
    }
    %c0_i32_5 = arith.constant 0 : i32
    %10 = arith.cmpi eq, %arg1, %c0_i32_5 : i32
    %11 = arith.extui %10 : i1 to i32
    %c0_i32_6 = arith.constant 0 : i32
    %12 = arith.cmpi ne, %11, %c0_i32_6 : i32
    scf.if %12 {
      %c0_7 = arith.constant 0 : index
      %c0_8 = arith.constant 0 : index
      %13 = vector.load %arg4[%c0_7, %c0_8] : memref<8x128xf32, #tpu.memory_space<vmem>>, vector<8x128xf32>
      %cst = arith.constant dense<0.000000e+00> : vector<8xf32>
      %14 = vector.multi_reduction <add>, %13, %cst [1] : vector<8x128xf32> to vector<8xf32>
      %15 = vector.shape_cast %14 : vector<8xf32> to vector<8x1xf32>
      %cst_9 = arith.constant 3.125000e-02 : f32
      %16 = vector.broadcast %cst_9 : f32 to vector<8x1xf32>
      %17 = arith.mulf %15, %16 : vector<8x1xf32>
      %c0_10 = arith.constant 0 : index
      %c0_11 = arith.constant 0 : index
      %18 = vector.load %arg3[%c0_10, %c0_11] : memref<8x1xf32, #tpu.memory_space<vmem>>, vector<8x1xf32>
      tpu.vector_store %arg3[%c0_10, %c0_11], %17 {strides = array<i32>} : memref<8x1xf32, #tpu.memory_space<vmem>>, vector<8x1xf32>,
    } else {
    }
    return
  }
  func.func @transform_0(%arg0: i32, %arg1: i32) -> (i32, i32) {
    %c0_i32 = arith.constant 0 : i32
    %0 = arith.addi %arg1, %c0_i32 : i32
    %c0_i32_0 = arith.constant 0 : i32
    return %arg0, %0 : i32, i32
  }
  func.func @transform_1(%arg0: i32, %arg1: i32) -> (i32, i32) {
    %c0_i32 = arith.constant 0 : i32
    %c0_i32_0 = arith.constant 0 : i32
    return %arg0, %c0_i32 : i32, i32
  }
}

</mosaic_0001>

<bundles_post_ra>
// kernel: tpu_custom_call.1
= control target key start
LH: loop header
LB: loop body
LE: loop exit
PB: predicated region body
PF: predicated region fallthrough
CT: control target
= control target key end

     0   :  { %6 = vsyncpa [#allocation4], 0  ;;  %s89_s9 = smov [#allocation3]   ;;  %s106_s0 = inlined_call_operand.hbm [shape: f32[8,128], index: 0, kind: input, shape index: {}]   ;;  %s107_s1 = inlined_call_operand.vmem [shape: f32[8,1], index: 1, kind: output, shape index: {}]  }
   0x1   :  { %s12_s8 = sshll.u32 %s106_s0, 4  ;;  %s14_s10 = sshll.u32 %s89_s9, 4  ;;  %s13_s8 = int_to_ptr.hbm [resolvable:$true] %s12_s8  ;;  %s15_s10 = int_to_ptr.vmem [resolvable:$true] %s14_s10 }
   0x2   :  { %17 = dma.hbm_to_vmem [thread:$0]  %s13_s8, 128, %s15_s10, [#allocation4]  }
   0x3   :  { %87 = dma.done.wait [#allocation4], 128  }
   0x4   :  { %88 = vsyncadd [#allocation4], 4294967168  ;;  %v31_v0 = vlaneseq  ;;  %v27_v2 = vld [vmem:[#allocation3] sm:$0xff]  ;;  %vm55_vm1 = vcmask 7168  }
   0x6   :  { %v32_v1 = vand.u32 127, %v31_v0 }
   0x8   :  { %vm36_vm0 = vcmp.ge.s32.totalorder %v32_v1, 96 }
   0x9   :  { %v37_v3 = vsel %vm36_vm0, %v27_v2, 0.0 }
   0xa   :  { %52 = vadd.xlane.f32.xlu0 %v37_v3 }
  0x7d   :  { %v53_v4 = vpop.xlane.xlu0 %52 }
  0x7e   :  { %v54_v5 = vmul.f32 0.03125, %v53_v4 }
  0x80   :  { %56 = vst.msk [vmem:[%s107_s1] sm:$0xff] %vm55_vm1, %v54_v5 }
  0x81   :  { %61 = vsyncpa [#allocation4], 1 }

</bundles_post_ra>
